<compile_context>
chip_gen: v7x
topology: tpu7x:2x2x1
jax: 0.10.0
libtpu: 0.0.40
codegen_flags: <defaults>
</compile_context>

<pallas_src>
import functools

import jax
import jax.numpy as jnp
from jax.experimental import pallas as pl
from jax.experimental.pallas import tpu as pltpu

NEG_SLOPE = 0.01   # nn.LeakyReLU default
EPS = 1e-5         # adaIN eps


def _adain(feat, mean_style, std_style):
    """adaIN over the last dim. torch.std(dim=-1) is UNBIASED (divides by C-1)."""
    C = feat.shape[-1]
    # Fused single pass: the two reductions are independent (no mean-then-center chain).
    s = jnp.sum(feat, axis=-1, keepdims=True)
    sq = jnp.sum(feat * feat, axis=-1, keepdims=True)
    mean = s * (1.0 / C)
    var = (sq - C * mean * mean) * (1.0 / (C - 1))
    var = jnp.maximum(var, 0.0)                       # guard tiny negatives (one-pass form)
    # Per-row (tb, 1) quantity; approx=True uses the EUP slot and drops VPU refinement.
    inv_std = pl.reciprocal(jnp.sqrt(var) + EPS, approx=True)
    scale = std_style * inv_std
    return (feat - mean) * scale + mean_style


def _leaky_relu(x):
    return jnp.where(x > 0, x, NEG_SLOPE * x)


def resblock_kernel(x_ref, psi_ref, w1t_ref, b1_ref, w2t_ref, b2_ref, o_ref):
    psi = psi_ref[...].astype(jnp.float32)
    # psi_slice.chunk(4, dim=-1) -> four (B, 1) style scalars (chunk 3 unused).
    m0 = psi[:, 0:1]
    s1 = psi[:, 1:2]
    m2 = psi[:, 2:3]

    out = _adain(x_ref[...].astype(jnp.float32), m0, s1)
    out = _leaky_relu(out)
    out = jnp.dot(out.astype(jnp.bfloat16), w1t_ref[...],
                  preferred_element_type=jnp.float32) + b1_ref[...]
    out = _adain(out, m2, m0)
    out = _leaky_relu(out)
    out = jnp.dot(out.astype(jnp.bfloat16), w2t_ref[...],
                  preferred_element_type=jnp.float32) + b2_ref[...]
    # Residual: FRESH read of the resident x tile at the use point (no f32 copy kept
    # live across both matmuls -> no spill traffic, less VMEM pressure).
    o_ref[...] = (out + x_ref[...].astype(jnp.float32)).astype(o_ref.dtype)


def prepare_params(w1, b1, w2, b2):
    """One-time parameter prep (outside the per-call path): pre-transpose so the kernel
    computes x @ W^T as x @ Wt, and cast the MXU weight operands to bf16
    (spectral-normalized weights are bf16-friendly). Biases stay f32."""
    C = w1.shape[0]
    return (jnp.transpose(w1).astype(jnp.bfloat16),
            b1.reshape(1, C).astype(jnp.float32),
            jnp.transpose(w2).astype(jnp.bfloat16),
            b2.reshape(1, C).astype(jnp.float32))


def _tpu_generation():
    try:
        dev = jax.devices()[0]
        if dev.platform != "tpu":
            return "unknown"
        kind = dev.device_kind.lower()
    except Exception:
        return "unknown"
    if "v7" in kind or "tpu7" in kind:
        return "v7x"
    if "v6" in kind:
        return "v6e"
    if "v5" in kind:
        return "v5e"
    return "unknown"


def _round_up(n, m):
    return -(-n // m) * m


def _plan(B, C, x_itemsize, block_b):
    """Per-generation batch tile and VMEM limit."""
    gen = _tpu_generation()
    if block_b is not None:
        tb = min(block_b, B)
    else:
        # 128 MiB-VMEM parts (v5e/v6e): big tiles amortize the ~0.35us/grid-step cost.
        # v7x: 64 MiB/TC and 2 TensorCores -> smaller tiles, grid_b >= 2 when possible.
        target = {"v5e": 512, "v6e": 512, "v7x": 256}.get(gen, 256)
        tb = min(B, target)
        if gen == "v7x" and B >= 16:
            tb = min(tb, _round_up(-(-B // 2), 8))     # ensure >= 2 grid steps (2 TCs)
        if tb < B:
            tb = _round_up(tb, 8)
    cap_mib = {"v5e": 100, "v6e": 100, "v7x": 48}.get(gen, 64)
    est = (2 * 2 * tb * C * max(x_itemsize, 4)   # x + out tiles, double-buffered
           + 2 * tb * 4 * 4                      # psi tile, double-buffered
           + 2 * C * C * 2                       # w1^T + w2^T: bf16, single-buffered
           + 2 * C * 4)                          # biases
    vmem_limit = int(min(max(2 * est, 32 << 20), cap_mib << 20))
    return tb, vmem_limit


@functools.partial(jax.jit, static_argnames=("tb", "vmem_limit"))
def _resblock_impl(x, psi, w1t, b1r, w2t, b2r, *, tb, vmem_limit):
    B, C = x.shape
    grid_b = pl.cdiv(B, tb)
    if grid_b > 1 and tb % 8 != 0:
        raise ValueError("block_b must be a multiple of 8 when tiling the batch")
    b_pad = grid_b * tb
    if b_pad != B:
        # x and psi are padded in lockstep: zero psi rows force the adaIN scale of the
        # zero-variance padded rows to 0, keeping everything finite.
        x = jnp.pad(x, ((0, b_pad - B), (0, 0)))
        psi = jnp.pad(psi, ((0, b_pad - B), (0, 0)))

    cost = pl.CostEstimate(
        flops=4 * b_pad * C * C,                       # two CxC matmuls
        transcendentals=4 * b_pad,                     # sqrt + reciprocal per adaIN row
        bytes_accessed=(2 * b_pad * C * x.dtype.itemsize + b_pad * 4 * 4
                        + 2 * C * C * 2 + 2 * C * 4),
    )

    resident = pl.Buffered(1)   # constant-index operands: single VMEM buffer, no re-DMA
    out = pl.pallas_call(
        resblock_kernel,
        out_shape=jax.ShapeDtypeStruct((b_pad, C), x.dtype),
        grid=(grid_b,),
        in_specs=[
            pl.BlockSpec((tb, C), lambda i: (i, 0)),                          # x (pipelined)
            pl.BlockSpec((tb, 4), lambda i: (i, 0)),                          # psi (pipelined)
            pl.BlockSpec((C, C), lambda i: (0, 0), pipeline_mode=resident),   # w1^T (resident)
            pl.BlockSpec((1, C), lambda i: (0, 0), pipeline_mode=resident),   # b1   (resident)
            pl.BlockSpec((C, C), lambda i: (0, 0), pipeline_mode=resident),   # w2^T (resident)
            pl.BlockSpec((1, C), lambda i: (0, 0), pipeline_mode=resident),   # b2   (resident)
        ],
        out_specs=pl.BlockSpec((tb, C), lambda i: (i, 0)),
        compiler_params=pltpu.CompilerParams(
            dimension_semantics=("parallel",),
            vmem_limit_bytes=vmem_limit,
        ),
        cost_estimate=cost,
    )(x, psi, w1t, b1r, w2t, b2r)

    return out[:B] if b_pad != B else out


def resblock(x, psi, w1t, b1r, w2t, b2r, *, block_b=None):
    """x: (B, C) f32 or bf16; psi: (B, 4); w*t: (C, C) bf16 pre-transposed; b*r: (1, C) f32.
    Output follows x.dtype (bf16 at the boundary halves HBM traffic for bandwidth-bound
    shapes; the kernel upcasts to f32 internally for adaIN either way)."""
    B, C = x.shape
    tb, vmem_limit = _plan(B, C, jnp.dtype(x.dtype).itemsize, block_b)
    return _resblock_impl(x, psi, w1t, b1r, w2t, b2r, tb=tb, vmem_limit=vmem_limit)


def spectral_normalize(w):
    # nn.utils.spectral_norm reparameterizes W -> W / sigma_max(W); we apply the exact
    # largest singular value (a converged power iteration) at one-time param prep.
    return w / jnp.linalg.norm(w, ord=2)


def _reference(x, psi, w1, b1, w2, b2, *, matmul_dtype=jnp.float32):
    """Pure-JAX reference of the PyTorch forward. matmul_dtype=bfloat16 gives the
    precision-matched reference for the bf16-MXU kernel."""
    m0, s1, m2 = psi[:, 0:1], psi[:, 1:2], psi[:, 2:3]

    def adain(f, m, s):
        C = f.shape[-1]
        mf = jnp.mean(f, axis=-1, keepdims=True)
        cen = f - mf
        var = jnp.sum(cen * cen, axis=-1, keepdims=True) / (C - 1)
        return s * cen / (jnp.sqrt(var) + EPS) + m

    def lin(a, w, b):
        return jnp.dot(a.astype(matmul_dtype), w.T.astype(matmul_dtype),
                       preferred_element_type=jnp.float32) + b

    out = adain(x, m0, s1)
    out = _leaky_relu(out)
    out = lin(out, w1, b1)
    out = adain(out, m2, m0)
    out = _leaky_relu(out)
    out = lin(out, w2, b2)
    return out + x


if __name__ == "__main__":
    # Small test shapes. Production note: real MXU wins assume C aligned to 256
    # (v6e/v7x MXU is 2x256x256); do that alignment at the model level, since zero-
    # padding C inside this wrapper would change adaIN's mean/std over features.
    key = jax.random.PRNGKey(0)
    kx, kp, kw1, kb1, kw2, kb2, kx2, kp2 = jax.random.split(key, 8)

    C = 32
    B = 8
    x = jax.random.normal(kx, (B, C), dtype=jnp.float32)

    def make_psi(k, b):
        # Style scalars kept O(1) with the adaIN scale bounded away from 0 so the
        # numeric comparison below is well-conditioned (error amplification through
        # 1/std stays small). The kernel itself has no such requirement.
        raw = jax.random.normal(k, (b, 4), dtype=jnp.float32)
        m0 = 0.5 * jnp.tanh(raw[:, 0:1])
        sgn = jnp.where(raw[:, 1:2] >= 0, 1.0, -1.0)
        s1 = sgn * (1.0 + 0.3 * jnp.tanh(raw[:, 1:2]))
        return jnp.concatenate([m0, s1, raw[:, 2:4]], axis=-1)

    psi = make_psi(kp, B)

    # Deterministic synthetic weights, spectral-normalized in glue.
    w1 = spectral_normalize(jax.random.normal(kw1, (C, C), dtype=jnp.float32) * 0.1)
    b1 = jax.random.normal(kb1, (C,), dtype=jnp.float32) * 0.01
    w2 = spectral_normalize(jax.random.normal(kw2, (C, C), dtype=jnp.float32) * 0.1)
    b2 = jax.random.normal(kb2, (C,), dtype=jnp.float32) * 0.01

    params = prepare_params(w1, b1, w2, b2)          # one-time transpose + bf16 cast

    out = jax.block_until_ready(resblock(x, psi, *params))
    assert out.shape == (B, C)
    assert bool(jnp.all(jnp.isfinite(out)))

    # Tight check vs the precision-matched reference (bf16 MXU inputs, f32 accumulate).
    ref_bf16 = _reference(x, psi, w1, b1, w2, b2, matmul_dtype=jnp.bfloat16)
    assert jnp.allclose(out, ref_bf16, atol=3e-2, rtol=2e-2), "mismatch vs bf16-matched reference"
    # Loose sanity check vs the full-f32 torch-semantics reference.
    ref_f32 = _reference(x, psi, w1, b1, w2, b2, matmul_dtype=jnp.float32)
    assert jnp.allclose(out, ref_f32, atol=1.25e-1, rtol=5e-2), "mismatch vs f32 reference"

    # Second case: multi-step grid (block_b=8 -> grid of 3) with batch padding; this
    # exercises the single-buffered resident-weight path across several pipeline steps.
    B2 = 20
    x2 = jax.random.normal(kx2, (B2, C), dtype=jnp.float32)
    psi2 = make_psi(kp2, B2)
    out2 = jax.block_until_ready(resblock(x2, psi2, *params, block_b=8))
    assert out2.shape == (B2, C)
    assert bool(jnp.all(jnp.isfinite(out2)))
    ref2 = _reference(x2, psi2, w1, b1, w2, b2, matmul_dtype=jnp.bfloat16)
    assert jnp.allclose(out2, ref2, atol=3e-2, rtol=2e-2), "mismatch vs reference (tiled grid)"

    print("KERNEL_OK")
</pallas_src>

<mosaic_0001>
module attributes {stable_mosaic.version = 11 : i64} {
  func.func @resblock_kernel(%arg0: i32, %arg1: memref<8x32xf32, #tpu.memory_space<vmem>>, %arg2: memref<8x4xf32, #tpu.memory_space<vmem>>, %arg3: memref<32x32xbf16, #tpu.memory_space<vmem>>, %arg4: memref<1x32xf32, #tpu.memory_space<vmem>>, %arg5: memref<32x32xbf16, #tpu.memory_space<vmem>>, %arg6: memref<1x32xf32, #tpu.memory_space<vmem>>, %arg7: memref<8x32xf32, #tpu.memory_space<vmem>>) attributes {dimension_semantics = [#tpu.dimension_semantics<parallel>], iteration_bounds = array<i64: 1>, scalar_prefetch = 0 : i64, scratch_operands = 0 : i64, tpu.core_type = #tpu.core_type<tc>, window_params = [{transform_indices = @transform_0, window_bounds = array<i64: 8, 32>}, {transform_indices = @transform_1, window_bounds = array<i64: 8, 4>}, {pipeline_mode = #tpu.pipeline_mode<synchronous>, transform_indices = @transform_2, window_bounds = array<i64: 32, 32>}, {pipeline_mode = #tpu.pipeline_mode<synchronous>, transform_indices = @transform_3, window_bounds = array<i64: 1, 32>}, {pipeline_mode = #tpu.pipeline_mode<synchronous>, transform_indices = @transform_4, window_bounds = array<i64: 32, 32>}, {pipeline_mode = #tpu.pipeline_mode<synchronous>, transform_indices = @transform_5, window_bounds = array<i64: 1, 32>}, {transform_indices = @transform_6, window_bounds = array<i64: 8, 32>}]} {
    %c0 = arith.constant 0 : index
    %c0_0 = arith.constant 0 : index
    %0 = vector.load %arg2[%c0, %c0_0] : memref<8x4xf32, #tpu.memory_space<vmem>>, vector<8x4xf32>
    %1 = vector.extract_strided_slice %0 {offsets = [0, 0], sizes = [8, 1], strides = [1, 1]} : vector<8x4xf32> to vector<8x1xf32>
    %2 = vector.extract_strided_slice %0 {offsets = [0, 1], sizes = [8, 1], strides = [1, 1]} : vector<8x4xf32> to vector<8x1xf32>
    %3 = vector.extract_strided_slice %0 {offsets = [0, 2], sizes = [8, 1], strides = [1, 1]} : vector<8x4xf32> to vector<8x1xf32>
    %c0_1 = arith.constant 0 : index
    %c0_2 = arith.constant 0 : index
    %4 = vector.load %arg1[%c0_1, %c0_2] : memref<8x32xf32, #tpu.memory_space<vmem>>, vector<8x32xf32>
    %cst = arith.constant dense<0.000000e+00> : vector<8xf32>
    %5 = vector.multi_reduction <add>, %4, %cst [1] : vector<8x32xf32> to vector<8xf32>
    %6 = vector.shape_cast %5 : vector<8xf32> to vector<8x1xf32>
    %7 = arith.mulf %4, %4 : vector<8x32xf32>
    %cst_3 = arith.constant dense<0.000000e+00> : vector<8xf32>
    %8 = vector.multi_reduction <add>, %7, %cst_3 [1] : vector<8x32xf32> to vector<8xf32>
    %9 = vector.shape_cast %8 : vector<8xf32> to vector<8x1xf32>
    %cst_4 = arith.constant 3.125000e-02 : f32
    %10 = vector.broadcast %cst_4 : f32 to vector<8x1xf32>
    %11 = arith.mulf %6, %10 : vector<8x1xf32>
    %cst_5 = arith.constant 3.200000e+01 : f32
    %12 = vector.broadcast %cst_5 : f32 to vector<8x1xf32>
    %13 = arith.mulf %12, %11 : vector<8x1xf32>
    %14 = arith.mulf %13, %11 : vector<8x1xf32>
    %15 = arith.subf %9, %14 : vector<8x1xf32>
    %cst_6 = arith.constant 0.0322580636 : f32
    %16 = vector.broadcast %cst_6 : f32 to vector<8x1xf32>
    %17 = arith.mulf %15, %16 : vector<8x1xf32>
    %cst_7 = arith.constant 0.000000e+00 : f32
    %18 = vector.broadcast %cst_7 : f32 to vector<8x1xf32>
    %19 = arith.maximumf %17, %18 : vector<8x1xf32>
    %20 = math.sqrt %19 : vector<8x1xf32>
    %cst_8 = arith.constant 9.99999974E-6 : f32
    %21 = vector.broadcast %cst_8 : f32 to vector<8x1xf32>
    %22 = arith.addf %20, %21 : vector<8x1xf32>
    %23 = tpu.reciprocal %22 {approx = true} : vector<8x1xf32> -> vector<8x1xf32>
    %24 = arith.mulf %2, %23 : vector<8x1xf32>
    %25 = vector.broadcast %11 : vector<8x1xf32> to vector<8x32xf32>
    %26 = arith.subf %4, %25 : vector<8x32xf32>
    %27 = vector.broadcast %24 : vector<8x1xf32> to vector<8x32xf32>
    %28 = arith.mulf %26, %27 : vector<8x32xf32>
    %29 = vector.broadcast %1 : vector<8x1xf32> to vector<8x32xf32>
    %30 = arith.addf %28, %29 : vector<8x32xf32>
    %cst_9 = arith.constant 0.000000e+00 : f32
    %31 = vector.broadcast %cst_9 : f32 to vector<8x32xf32>
    %32 = arith.cmpf ogt, %30, %31 : vector<8x32xf32>
    %cst_10 = arith.constant 0.00999999977 : f32
    %33 = vector.broadcast %cst_10 : f32 to vector<8x32xf32>
    %34 = arith.mulf %33, %30 : vector<8x32xf32>
    %35 = arith.select %32, %30, %34 : vector<8x32xi1>, vector<8x32xf32>
    %36 = arith.truncf %35 : vector<8x32xf32> to vector<8x32xbf16>
    %c0_11 = arith.constant 0 : index
    %c0_12 = arith.constant 0 : index
    %37 = vector.load %arg3[%c0_11, %c0_12] : memref<32x32xbf16, #tpu.memory_space<vmem>>, vector<32x32xbf16>
    %cst_13 = arith.constant dense<0.000000e+00> : vector<8x32xf32>
    %38 = tpu.matmul %36, %37, %cst_13 {dimension_numbers = #tpu.dot_dimension_numbers<[1], [0], [0], [1], [0, 0, 1, 1], [], []>} : vector<8x32xbf16>, vector<32x32xbf16>, vector<8x32xf32> -> vector<8x32xf32>
    %c0_14 = arith.constant 0 : index
    %c0_15 = arith.constant 0 : index
    %39 = vector.load %arg4[%c0_14, %c0_15] : memref<1x32xf32, #tpu.memory_space<vmem>>, vector<1x32xf32>
    %40 = vector.broadcast %39 : vector<1x32xf32> to vector<8x32xf32>
    %41 = arith.addf %38, %40 : vector<8x32xf32>
    %cst_16 = arith.constant dense<0.000000e+00> : vector<8xf32>
    %42 = vector.multi_reduction <add>, %41, %cst_16 [1] : vector<8x32xf32> to vector<8xf32>
    %43 = vector.shape_cast %42 : vector<8xf32> to vector<8x1xf32>
    %44 = arith.mulf %41, %41 : vector<8x32xf32>
    %cst_17 = arith.constant dense<0.000000e+00> : vector<8xf32>
    %45 = vector.multi_reduction <add>, %44, %cst_17 [1] : vector<8x32xf32> to vector<8xf32>
    %46 = vector.shape_cast %45 : vector<8xf32> to vector<8x1xf32>
    %cst_18 = arith.constant 3.125000e-02 : f32
    %47 = vector.broadcast %cst_18 : f32 to vector<8x1xf32>
    %48 = arith.mulf %43, %47 : vector<8x1xf32>
    %cst_19 = arith.constant 3.200000e+01 : f32
    %49 = vector.broadcast %cst_19 : f32 to vector<8x1xf32>
    %50 = arith.mulf %49, %48 : vector<8x1xf32>
    %51 = arith.mulf %50, %48 : vector<8x1xf32>
    %52 = arith.subf %46, %51 : vector<8x1xf32>
    %cst_20 = arith.constant 0.0322580636 : f32
    %53 = vector.broadcast %cst_20 : f32 to vector<8x1xf32>
    %54 = arith.mulf %52, %53 : vector<8x1xf32>
    %cst_21 = arith.constant 0.000000e+00 : f32
    %55 = vector.broadcast %cst_21 : f32 to vector<8x1xf32>
    %56 = arith.maximumf %54, %55 : vector<8x1xf32>
    %57 = math.sqrt %56 : vector<8x1xf32>
    %cst_22 = arith.constant 9.99999974E-6 : f32
    %58 = vector.broadcast %cst_22 : f32 to vector<8x1xf32>
    %59 = arith.addf %57, %58 : vector<8x1xf32>
    %60 = tpu.reciprocal %59 {approx = true} : vector<8x1xf32> -> vector<8x1xf32>
    %61 = arith.mulf %1, %60 : vector<8x1xf32>
    %62 = vector.broadcast %48 : vector<8x1xf32> to vector<8x32xf32>
    %63 = arith.subf %41, %62 : vector<8x32xf32>
    %64 = vector.broadcast %61 : vector<8x1xf32> to vector<8x32xf32>
    %65 = arith.mulf %63, %64 : vector<8x32xf32>
    %66 = vector.broadcast %3 : vector<8x1xf32> to vector<8x32xf32>
    %67 = arith.addf %65, %66 : vector<8x32xf32>
    %cst_23 = arith.constant 0.000000e+00 : f32
    %68 = vector.broadcast %cst_23 : f32 to vector<8x32xf32>
    %69 = arith.cmpf ogt, %67, %68 : vector<8x32xf32>
    %cst_24 = arith.constant 0.00999999977 : f32
    %70 = vector.broadcast %cst_24 : f32 to vector<8x32xf32>
    %71 = arith.mulf %70, %67 : vector<8x32xf32>
    %72 = arith.select %69, %67, %71 : vector<8x32xi1>, vector<8x32xf32>
    %73 = arith.truncf %72 : vector<8x32xf32> to vector<8x32xbf16>
    %c0_25 = arith.constant 0 : index
    %c0_26 = arith.constant 0 : index
    %74 = vector.load %arg5[%c0_25, %c0_26] : memref<32x32xbf16, #tpu.memory_space<vmem>>, vector<32x32xbf16>
    %cst_27 = arith.constant dense<0.000000e+00> : vector<8x32xf32>
    %75 = tpu.matmul %73, %74, %cst_27 {dimension_numbers = #tpu.dot_dimension_numbers<[1], [0], [0], [1], [0, 0, 1, 1], [], []>} : vector<8x32xbf16>, vector<32x32xbf16>, vector<8x32xf32> -> vector<8x32xf32>
    %c0_28 = arith.constant 0 : index
    %c0_29 = arith.constant 0 : index
    %76 = vector.load %arg6[%c0_28, %c0_29] : memref<1x32xf32, #tpu.memory_space<vmem>>, vector<1x32xf32>
    %77 = vector.broadcast %76 : vector<1x32xf32> to vector<8x32xf32>
    %78 = arith.addf %75, %77 : vector<8x32xf32>
    %c0_30 = arith.constant 0 : index
    %c0_31 = arith.constant 0 : index
    %79 = vector.load %arg1[%c0_30, %c0_31] : memref<8x32xf32, #tpu.memory_space<vmem>>, vector<8x32xf32>
    %80 = arith.addf %78, %79 : vector<8x32xf32>
    %c0_32 = arith.constant 0 : index
    %c0_33 = arith.constant 0 : index
    %81 = vector.load %arg7[%c0_32, %c0_33] : memref<8x32xf32, #tpu.memory_space<vmem>>, vector<8x32xf32>
    tpu.vector_store %arg7[%c0_32, %c0_33], %80 {strides = array<i32>} : memref<8x32xf32, #tpu.memory_space<vmem>>, vector<8x32xf32>,
    return
  }
  func.func @transform_0(%arg0: i32) -> (i32, i32) {
    %c0_i32 = arith.constant 0 : i32
    %c0_i32_0 = arith.constant 0 : i32
    return %arg0, %c0_i32 : i32, i32
  }
  func.func @transform_1(%arg0: i32) -> (i32, i32) {
    %c0_i32 = arith.constant 0 : i32
    %c0_i32_0 = arith.constant 0 : i32
    return %arg0, %c0_i32 : i32, i32
  }
  func.func @transform_2(%arg0: i32) -> (i32, i32) {
    %c0_i32 = arith.constant 0 : i32
    %c0_i32_0 = arith.constant 0 : i32
    %c0_i32_1 = arith.constant 0 : i32
    return %c0_i32, %c0_i32_0 : i32, i32
  }
  func.func @transform_3(%arg0: i32) -> (i32, i32) {
    %c0_i32 = arith.constant 0 : i32
    %c0_i32_0 = arith.constant 0 : i32
    %c0_i32_1 = arith.constant 0 : i32
    return %c0_i32, %c0_i32_0 : i32, i32
  }
  func.func @transform_4(%arg0: i32) -> (i32, i32) {
    %c0_i32 = arith.constant 0 : i32
    %c0_i32_0 = arith.constant 0 : i32
    %c0_i32_1 = arith.constant 0 : i32
    return %c0_i32, %c0_i32_0 : i32, i32
  }
  func.func @transform_5(%arg0: i32) -> (i32, i32) {
    %c0_i32 = arith.constant 0 : i32
    %c0_i32_0 = arith.constant 0 : i32
    %c0_i32_1 = arith.constant 0 : i32
    return %c0_i32, %c0_i32_0 : i32, i32
  }
  func.func @transform_6(%arg0: i32) -> (i32, i32) {
    %c0_i32 = arith.constant 0 : i32
    %c0_i32_0 = arith.constant 0 : i32
    return %arg0, %c0_i32 : i32, i32
  }
}

</mosaic_0001>

<bundles_post_ra>
// kernel: _resblock_impl.1
= control target key start
LH: loop header
LB: loop body
LE: loop exit
PB: predicated region body
PF: predicated region fallthrough
CT: control target
= control target key end

     0   :  { %11 = vsyncpa [#allocation3], 0  ;;  %s529_s0 = inlined_call_operand.hbm [shape: f32[8,32], index: 0, kind: input, shape index: {}]   ;;  %s530_s1 = inlined_call_operand.vmem [shape: f32[8,4], index: 1, kind: input, shape index: {}]   ;;  %s531_s2 = inlined_call_operand.vmem [shape: bf16[32,32], index: 2, kind: input, shape index: {}]   ;;  %s532_s3 = inlined_call_operand.vmem [shape: f32[1,32], index: 3, kind: input, shape index: {}]   ;;  %s533_s4 = inlined_call_operand.hbm [shape: bf16[32,32], index: 4, kind: input, shape index: {}]   ;;  %s534_s5 = inlined_call_operand.vmem [shape: f32[1,32], index: 5, kind: input, shape index: {}]   ;;  %s535_s6 = inlined_call_operand.hbm [shape: f32[8,32], index: 6, kind: output, shape index: {}]  }
   0x1   :  { %12 = vsyncpa [#allocation6], 0 }
   0x2   :  { %13 = vsyncpa [#allocation4], 0  ;;  %s412_s21 = smov [#allocation2]   ;;  %s413_s23 = smov [#allocation5]  }
   0x3   :  { %s20_s22 = sshll.u32 %s412_s21, 4  ;;  %s35_s24 = sshll.u32 %s413_s23, 4  ;;  %s21_s22 = int_to_ptr.vmem [resolvable:$true] %s20_s22  ;;  %s457_s24 = int_to_ptr.vmem [resolvable:$true] %s35_s24 }
   0x4   :  { %s340_s27 = scalar_lea.hbm %s529_s0, 128 }
   0x5   :  { %p341_p0 = scmp.ne.s32.totalorder %s529_s0, %s340_s27  ;;  %p344_p1 = scmp.lt.u32.totalorder %s340_s27, %s529_s0 }
   0x7   :  { %p346_p2 = pnand %p344_p1, %p341_p0 }
   0x9   :  { %349 = shalt.err (!%p346_p2)
}
   0xa   :  { %s350_s8 = scalar_lea.vmem %s21_s22, 128  ;;  %p355_p4 = scmp.lt.s32.totalorder %s21_s22, %s21_s22 }
   0xb   :  { %p351_p3 = scmp.ne.s32.totalorder %s21_s22, %s350_s8  ;;  %p356_p5 = scmp.lt.s32.totalorder %s350_s8, %s350_s8 }
   0xd   :  { %p357_p6 = por %p356_p5, %p355_p4 }
   0xf   :  { %p358_p7 = pnand %p357_p6, %p351_p3 }
  0x11   :  { %361 = shalt.err (!%p358_p7)
}
  0x12   :  { %23 = dma.hbm_to_vmem [thread:$0]  %s529_s0, 128, %s21_s22, [#allocation3]  }
  0x13   :  { %s362_s13 = scalar_lea.hbm %s533_s4, 256 }
  0x14   :  { %p363_p8 = scmp.ne.s32.totalorder %s533_s4, %s362_s13  ;;  %p366_p9 = scmp.lt.u32.totalorder %s362_s13, %s533_s4 }
  0x16   :  { %p368_p10 = pnand %p366_p9, %p363_p8 }
  0x18   :  { %371 = shalt.err (!%p368_p10)
}
  0x19   :  { %s372_s18 = scalar_lea.vmem %s457_s24, 256  ;;  %p377_p12 = scmp.lt.s32.totalorder %s457_s24, %s457_s24 }
  0x1a   :  { %p373_p11 = scmp.ne.s32.totalorder %s457_s24, %s372_s18  ;;  %p378_p13 = scmp.lt.s32.totalorder %s372_s18, %s372_s18 }
  0x1c   :  { %p379_p0 = por %p378_p13, %p377_p12 }
  0x1e   :  { %p380_p1 = pnand %p379_p0, %p373_p11 }
  0x20   :  { %383 = shalt.err (!%p380_p1)
}
  0x21   :  { %s414_s0 = smov 64   ;;  %s415_s19 = smov 4  }
  0x22   :  { %41 = dma.hbm_to_vmem [thread:$0]  %s533_s4, 256, %s457_s24, [#allocation6], %s414_s0, %s414_s0, %s415_s19  }
  0x23   :  { %406 = dma.done.wait [#allocation3], 128  }
  0x24   :  { %407 = vsyncadd [#allocation3], 4294967168 }
  0x25   :  { %408 = dma.done.wait [#allocation6], 256  }
  0x26   :  { %409 = vsyncadd [#allocation6], 4294967040  ;;  %vm53_vm0 = vcmask 261120   ;;  %v488_v0 = vld [vmem:[#allocation2] sm:$0xff]  ;;  %v416_v4 = vmov 1   ;;  %v417_v5 = vmov 0  }
  0x27   :  { %v54_v1 = vsel %vm53_vm0, %v488_v0, 0.0  ;;  %v57_v2 = vmul.f32 %v488_v0, %v488_v0  ;;  %323 = vset.pattern.permute.xlu1 %v416_v4  ;;  %325 = vset.pattern.permute.xlu0 %v417_v5  ;;  %v51_v20 = vld [vmem:[%s530_s1] sm:$0xff]  ;;  %v418_v23 = vmov 0.0   ;;  %v329_v25 = vld [vmem:[%s531_s2 + $0x8] sm:$0xff]   ;;  %vm419_vm3 = vmmov 0   ;;  %v331_v61 = vld [vmem:[#allocation5 + $0x8] sm:$0xff]  }
  0x28   :  { %55 = vadd.xlane.f32.xlu0 %v54_v1  ;;  %297 = vmatprep.subr.bf16.mxu0 %v418_v23  ;;  %v328_v24 = vld [vmem:[%s531_s2] sm:$0xff]   ;;  %v420_v43 = vmov 2   ;;  %v330_v60 = vld [vmem:[#allocation5] sm:$0xff]   ;;  %s421_s28 = smov [#allocation7]  }
  0x29   :  { %v58_v3 = vsel %vm53_vm0, %v57_v2, 0.0  ;;  %305 = vmatprep.subr.bf16.mxu1 %v418_v23  ;;  %298 = vmatpush3.bf16.msra.mxu0 %v328_v24  ;;  %v283_v34 = vld [vmem:[%s532_s3] ss:$0 sm:$0xff]  ;;  %s273_s29 = sshll.u32 %s421_s28, 4  ;;  %s274_s29 = int_to_ptr.vmem [resolvable:$true] %s273_s29 }
  0x2a   :  { %299 = vmatprep.subr.bf16.mxu0 %v418_v23  ;;  %301 = vmatprep.mubr.msk.bf16.mxu0 %vm419_vm3, %v418_v23  ;;  %s384_s30 = scalar_lea.vmem %s274_s29, 128  ;;  %p389_p3 = scmp.lt.s32.totalorder %s274_s29, %s274_s29 }
  0x2b   :  { %309 = vmatprep.mubr.msk.bf16.mxu1 %vm419_vm3, %v418_v23  ;;  %306 = vmatpush3.bf16.msra.mxu1 %v330_v60  ;;  %p385_p2 = scmp.ne.s32.totalorder %s274_s29, %s384_s30  ;;  %p390_p4 = scmp.lt.s32.totalorder %s384_s30, %s384_s30 }
  0x2c   :  { %59 = vadd.xlane.f32.xlu0 %v58_v3  ;;  %307 = vmatprep.subr.bf16.mxu1 %v418_v23 }
  0x2d   :  { %300 = vmatpush3.bf16.msra.mxu0 %v329_v25  ;;  %p391_p5 = por %p390_p4, %p389_p3 }
  0x2f   :  { %308 = vmatpush3.bf16.msra.mxu1 %v331_v61  ;;  %p392_p6 = pnand %p391_p5, %p385_p2 }
  0xb5   :  { %v56_v6 = vpop.xlane.xlu0 %55 }
  0xb6   :  { %v61_v7 = vmul.f32 0.03125, %v56_v6 }
  0xb8   :  { %v62_v8 = vmul.f32 32.0, %v61_v7  ;;  %v77_v27 = vsub.f32 %v488_v0, %v61_v7 }
  0xb9   :  { %v60_v9 = vpop.xlane.xlu0 %59 }
  0xba   :  { %v63_v10 = vmul.f32 %v62_v8, %v61_v7  ;;  %v287_v7 = vld [vmem:[%s534_s5] ss:$0 sm:$0xff] }
  0xbc   :  { %v64_v11 = vsub.f32 %v60_v9, %v63_v10 }
  0xbe   :  { %v65_v12 = vmul.f32 0.032258064, %v64_v11 }
  0xc0   :  { %v66_v13 = vmax.f32 %v65_v12, 0.0 }
  0xc2   :  { %332 = vrsqrt.f32 %v66_v13  ;;  %vm69_vm1 = vcmp.eq.f32.partialorder %v66_v13, inf  ;;  %v72_v16 = vand.u32 2147483648, %v66_v13  ;;  %vm71_vm2 = vcmp.eq.f32.partialorder %v66_v13, 0.0 }
  0xcc   :  { %v333_v14 = vpop.eup %332 }
  0xcd   :  { %v68_v15 = vmul.f32 %v333_v14, %v66_v13 }
  0xcf   :  { %v70_v17 = vsel %vm69_vm1, %v66_v13, %v68_v15 }
  0xd0   :  { %v73_v18 = vsel %vm71_vm2, %v72_v16, %v70_v17 }
  0xd1   :  { %v74_v19 = vadd.f32 1e-05, %v73_v18 }
  0xd3   :  { %334 = vrcp.f32 %v74_v19 }
  0xdd   :  { %v335_v21 = vpop.eup %334 }
  0xde   :  { %v76_v22 = vmul.f32 %v335_v21, %v51_v20 }
  0xe0   :  { %80 = vperm.xlu1 %323, %v76_v22  }
  0xe4   :  { %324 = vset.pattern.permute.xlu1 %v417_v5 }
  0xe5   :  { %86 = vperm.xlu1 %324, %v51_v20  }
  0xe9   :  { %326 = vset.pattern.permute.xlu1 %v420_v43 }
 0x15f   :  { %v81_v26 = vpop.permute.xlu1 %80 }
 0x160   :  { %v83_v28 = vmul.f32 %v81_v26, %v77_v27 }
 0x164   :  { %v87_v29 = vpop.permute.xlu1 %86 }
 0x165   :  { %v89_v30 = vadd.f32 %v87_v29, %v83_v28 }
 0x167   :  { %vm90_vm4 = vcmp.gt.f32.partialorder %v89_v30, 0.0  ;;  %v91_v31 = vmul.f32 0.01, %v89_v30 }
 0x169   :  { %v92_v32 = vsel %vm90_vm4, %v89_v30, %v91_v31 }
 0x16a   :  { %v93_v33 = vpack.c.bf16 %v92_v32, %v92_v32 }
 0x16c   :  { %302 = vmatmul.mubr.msk.bf16.vlgmr.msra.gmra.mrb[0].mxu0 %vm53_vm0, %v93_v33 }
 0x23f   :  { %v154_v35 = vpop.f32.mrb[0].mxu0 }
 0x240   :  { %v155_v36 = vadd.f32 %v283_v34, %v154_v35  ;;  %v303_v37 = vpop.f32.mrb[1].mxu0 }
 0x241   :  { %v157_v38 = vpop.f32.mrb[2].mxu0 }
 0x242   :  { %v304_v39 = vpop.f32.mrb[3].mxu0  ;;  %v160_v40 = vsel %vm53_vm0, %v155_v36, 0.0  ;;  %v163_v41 = vmul.f32 %v155_v36, %v155_v36 }
 0x243   :  { %161 = vadd.xlane.f32.xlu0 %v160_v40 }
 0x244   :  { %v164_v42 = vsel %vm53_vm0, %v163_v41, 0.0 }
 0x245   :  { %165 = vadd.xlane.f32.xlu1 %v164_v42 }
 0x256   :  { %191 = vperm.xlu1 %326, %v51_v20  }
 0x2d0   :  { %v162_v44 = vpop.xlane.xlu0 %161 }
 0x2d1   :  { %v167_v45 = vmul.f32 0.03125, %v162_v44 }
 0x2d2   :  { %v166_v48 = vpop.xlane.xlu1 %165 }
 0x2d3   :  { %v168_v46 = vmul.f32 32.0, %v167_v45  ;;  %v183_v62 = vsub.f32 %v155_v36, %v167_v45 }
 0x2d5   :  { %v169_v47 = vmul.f32 %v168_v46, %v167_v45 }
 0x2d6   :  { %v192_v1 = vpop.permute.xlu1 %191 }
 0x2d7   :  { %v170_v49 = vsub.f32 %v166_v48, %v169_v47 }
 0x2d9   :  { %v171_v50 = vmul.f32 0.032258064, %v170_v49 }
 0x2db   :  { %v172_v51 = vmax.f32 %v171_v50, 0.0 }
 0x2dd   :  { %336 = vrsqrt.f32 %v172_v51  ;;  %vm175_vm5 = vcmp.eq.f32.partialorder %v172_v51, inf  ;;  %v178_v54 = vand.u32 2147483648, %v172_v51  ;;  %vm177_vm6 = vcmp.eq.f32.partialorder %v172_v51, 0.0 }
 0x2e7   :  { %v337_v52 = vpop.eup %336 }
 0x2e8   :  { %v174_v53 = vmul.f32 %v337_v52, %v172_v51 }
 0x2ea   :  { %v176_v55 = vsel %vm175_vm5, %v172_v51, %v174_v53 }
 0x2eb   :  { %v179_v56 = vsel %vm177_vm6, %v178_v54, %v176_v55 }
 0x2ec   :  { %v180_v57 = vadd.f32 1e-05, %v179_v56 }
 0x2ee   :  { %338 = vrcp.f32 %v180_v57 }
 0x2f8   :  { %v339_v58 = vpop.eup %338 }
 0x2f9   :  { %v182_v59 = vmul.f32 %v339_v58, %v51_v20 }
 0x2fb   :  { %186 = vperm.xlu0 %325, %v182_v59  }
 0x2ff   :  { %327 = vset.pattern.permute.xlu0 %v420_v43 }
 0x37a   :  { %v187_v63 = vpop.permute.xlu0 %186 }
 0x37b   :  { %v189_v2 = vmul.f32 %v187_v63, %v183_v62 }
 0x37d   :  { %v194_v3 = vadd.f32 %v192_v1, %v189_v2 }
 0x37f   :  { %vm195_vm7 = vcmp.gt.f32.partialorder %v194_v3, 0.0  ;;  %v196_v4 = vmul.f32 0.01, %v194_v3 }
 0x381   :  { %v197_v5 = vsel %vm195_vm7, %v194_v3, %v196_v4 }
 0x382   :  { %v198_v6 = vpack.c.bf16 %v197_v5, %v197_v5 }
 0x384   :  { %310 = vmatmul.mubr.msk.bf16.vlgmr.msra.gmra.mrb[0].mxu1 %vm53_vm0, %v198_v6 }
 0x457   :  { %v259_v8 = vpop.f32.mrb[0].mxu1 }
 0x458   :  { %v260_v9 = vadd.f32 %v287_v7, %v259_v8  ;;  %v311_v10 = vpop.f32.mrb[1].mxu1 }
 0x459   :  { %v262_v11 = vpop.f32.mrb[2].mxu1 }
 0x45a   :  { %v265_v12 = vadd.f32 %v260_v9, %v488_v0  ;;  %v312_v13 = vpop.f32.mrb[3].mxu1 }
 0x45c   :  { %266 = vst.msk [vmem:[#allocation7] sm:$0xff] %vm53_vm0, %v265_v12 }
 0x45d   :  { %395 = shalt.err (!%p392_p6)
}
 0x45e   :  { %s396_s8 = scalar_lea.hbm %s535_s6, 128 }
 0x45f   :  { %p397_p7 = scmp.ne.s32.totalorder %s535_s6, %s396_s8  ;;  %p400_p8 = scmp.lt.u32.totalorder %s396_s8, %s535_s6 }
 0x461   :  { %p402_p9 = pnand %p400_p8, %p397_p7 }
 0x463   :  { %405 = shalt.err (!%p402_p9)
}
 0x464   :  { %276 = dma.vmem_to_hbm [thread:$0]  %s274_s29, 128, %s535_s6, [#allocation4]  }
 0x465   :  { %410 = dma.done.wait [#allocation4], 128  }
 0x466   :  { %411 = vsyncadd [#allocation4], 4294967168 }
 0x467   :  { %280 = vsyncpa [#allocation3], 1 }
 0x468   :  { %281 = vsyncpa [#allocation6], 1 }
 0x469   :  { %282 = vsyncpa [#allocation4], 1 }

</bundles_post_ra>
